<compile_context>
chip_gen: v5e
topology: v5e:2x2
jax: 0.10.0
libtpu: 0.0.40
codegen_flags: <defaults>
</compile_context>

<pallas_src>
import jax
import jax.numpy as jnp
import numpy as np
from jax.experimental import pallas as pl
from jax.experimental.pallas import tpu as pltpu


def _round_up(n: int, m: int) -> int:
    return (n + m - 1) // m * m


def _cdiv(a: int, b: int) -> int:
    return -(-a // b)


# --------------------------------------------------------------------------- kernel
def gan_transform_kernel(y_ref, n_ref, w1y_ref, w1n_ref, b1_ref,
                         w2_ref, b2_ref, w3_ref, b3_ref, out_ref):
    # Activations are cast to bf16 in-kernel (f32 streamed from HBM exactly once, MXU
    # eats bf16); dots accumulate in f32; bias add / leaky_relu stay in f32.
    y = y_ref[...].astype(jnp.bfloat16)
    n = n_ref[...].astype(jnp.bfloat16)

    # fc1 on the split weight: dot(y, w1y) + dot(noise, w1n) == dot(concat(y, noise), w1)
    h1 = (jnp.dot(y, w1y_ref[...], preferred_element_type=jnp.float32)
          + jnp.dot(n, w1n_ref[...], preferred_element_type=jnp.float32)
          + b1_ref[...])
    h1 = jnp.maximum(h1, 0.1 * h1)                       # leaky_relu(0.1): one vmax

    # fc2 + leaky_relu(0.1)
    h2 = jnp.dot(h1.astype(jnp.bfloat16), w2_ref[...],
                 preferred_element_type=jnp.float32) + b2_ref[...]
    h2 = jnp.maximum(h2, 0.1 * h2)

    # fc3: unpadded (out_dim-wide) f32 store
    out_ref[...] = (jnp.dot(h2.astype(jnp.bfloat16), w3_ref[...],
                            preferred_element_type=jnp.float32) + b3_ref[...])


# ---------------------------------------------------------------- one-time param prep
def prepare_params(params, y_dim):
    """Transpose to [in, out], split fc1 by (y, noise), cast weights to bf16 and
    zero-pad the hidden dim to a multiple of 128. Done once, outside the call path.
    Padded rows/cols are exactly zero, so padded lanes stay zero through leaky_relu
    and contribute nothing downstream. Output dim is NOT padded."""
    w1, b1, w2, b2, w3, b3 = params
    d, in_dim = w1.shape                       # fc1: [d, y_dim + x_dim]
    out_dim = w3.shape[0]                      # fc3: [x_dim, d]
    x_dim = in_dim - y_dim
    D_P = _round_up(d, 128)

    bf16, f32 = jnp.bfloat16, jnp.float32
    w1t = w1.T                                  # [in_dim, d]
    w1y = jnp.zeros((y_dim, D_P), bf16).at[:, :d].set(w1t[:y_dim].astype(bf16))
    w1n = jnp.zeros((x_dim, D_P), bf16).at[:, :d].set(w1t[y_dim:].astype(bf16))
    b1p = jnp.zeros((1, D_P), f32).at[0, :d].set(b1.astype(f32))
    w2t = jnp.zeros((D_P, D_P), bf16).at[:d, :d].set(w2.T.astype(bf16))
    b2p = jnp.zeros((1, D_P), f32).at[0, :d].set(b2.astype(f32))
    w3t = jnp.zeros((D_P, out_dim), bf16).at[:d, :].set(w3.T.astype(bf16))
    b3p = b3.reshape(1, out_dim).astype(f32)

    dims = dict(y_dim=y_dim, x_dim=x_dim, d=d, out_dim=out_dim, D_P=D_P)
    return (w1y, w1n, b1p, w2t, b2p, w3t, b3p), dims


# -------------------------------------------------------------------------- forward
@jax.jit
def _gan_transform_forward_pallas(y, noise, w1y, w1n, b1, w2, b2, w3, b3):
    B, y_dim = y.shape
    x_dim = noise.shape[1]
    D_P = w2.shape[0]
    out_dim = w3.shape[1]

    # Batch tiling: >= 2 tiles whenever B >= 16 (v7x megacore), tile cap 1024 to
    # amortize per-grid-step overhead, tile derived from B to minimize round-up waste.
    B8 = _round_up(B, 8)
    if B8 < 16:
        num_tiles, TILE_B = 1, B8
    else:
        num_tiles = max(2, _cdiv(B8, 1024))
        TILE_B = _round_up(_cdiv(B8, num_tiles), 8)
    B_pad = num_tiles * TILE_B

    if B_pad != B:
        y = jnp.pad(y, ((0, B_pad - B), (0, 0)))
        noise = jnp.pad(noise, ((0, B_pad - B), (0, 0)))

    # VMEM guard: weights are fully resident (no K/N tiling); x2 for default
    # double-buffering. Trivial at d=10, but guards the port to larger hidden dims
    # (v7x has only 64 MiB physical VMEM).
    weight_bytes = 2 * ((y_dim + x_dim) * D_P * 2 + D_P * D_P * 2 + D_P * out_dim * 2
                        + (2 * D_P + out_dim) * 4)
    act_bytes = 2 * TILE_B * (y_dim + x_dim) * 4 + 2 * TILE_B * out_dim * 4
    if weight_bytes + act_bytes > 24 * 1024 * 1024:
        # TODO(synk): K-tile fc2 over D_P (extra "arbitrary" grid axis + f32 VMEM
        # accumulator) before growing the hidden dim past a few thousand.
        raise NotImplementedError("hidden dim too large for fully-resident weights")

    out = pl.pallas_call(
        gan_transform_kernel,
        out_shape=jax.ShapeDtypeStruct((B_pad, out_dim), jnp.float32),
        grid=(num_tiles,),
        in_specs=[
            pl.BlockSpec((TILE_B, y_dim), lambda i: (i, 0)),   # y: batch-tiled, no lane pad
            pl.BlockSpec((TILE_B, x_dim), lambda i: (i, 0)),   # noise: batch-tiled
            pl.BlockSpec((y_dim, D_P), lambda i: (0, 0)),      # weights/biases: resident
            pl.BlockSpec((x_dim, D_P), lambda i: (0, 0)),
            pl.BlockSpec((1, D_P), lambda i: (0, 0)),
            pl.BlockSpec((D_P, D_P), lambda i: (0, 0)),
            pl.BlockSpec((1, D_P), lambda i: (0, 0)),
            pl.BlockSpec((D_P, out_dim), lambda i: (0, 0)),
            pl.BlockSpec((1, out_dim), lambda i: (0, 0)),
        ],
        out_specs=pl.BlockSpec((TILE_B, out_dim), lambda i: (i, 0)),
        compiler_params=pltpu.CompilerParams(
            dimension_semantics=("parallel",),
        ),
    )(y, noise, w1y, w1n, b1, w2, b2, w3, b3)

    return out[:B] if B_pad != B else out


@jax.jit
def _gan_transform_forward_xla(y, noise, w1y, w1n, b1, w2, b2, w3, b3):
    """Fused plain-XLA path for tiny batches (kernel launch overhead dominates there)."""
    yb = y.astype(jnp.bfloat16)
    nb = noise.astype(jnp.bfloat16)
    h1 = (jnp.dot(yb, w1y, preferred_element_type=jnp.float32)
          + jnp.dot(nb, w1n, preferred_element_type=jnp.float32) + b1)
    h1 = jnp.maximum(h1, 0.1 * h1)
    h2 = jnp.dot(h1.astype(jnp.bfloat16), w2, preferred_element_type=jnp.float32) + b2
    h2 = jnp.maximum(h2, 0.1 * h2)
    return jnp.dot(h2.astype(jnp.bfloat16), w3, preferred_element_type=jnp.float32) + b3


def gan_transform_forward(y, noise, prepped, dims, *, min_pallas_batch=256):
    """GAN_Transform.forward(y, noise): y [B, y_dim], noise [B, x_dim] -> [B, x_dim]."""
    del dims  # shapes are recovered from the prepped params
    if y.shape[0] < min_pallas_batch:
        return _gan_transform_forward_xla(y, noise, *prepped)
    return _gan_transform_forward_pallas(y, noise, *prepped)


# --------------------------------------------------------------- init / references
def init_params(key, d, input_size, output_size):
    """nn.Linear init from __initialize_weights: weight ~ N(0, 1), bias = 0."""
    k1, k2, k3 = jax.random.split(key, 3)
    w1 = jax.random.normal(k1, (d, input_size), jnp.float32)
    b1 = jnp.zeros((d,), jnp.float32)
    w2 = jax.random.normal(k2, (d, d), jnp.float32)
    b2 = jnp.zeros((d,), jnp.float32)
    w3 = jax.random.normal(k3, (output_size, d), jnp.float32)
    b3 = jnp.zeros((output_size,), jnp.float32)
    return (w1, b1, w2, b2, w3, b3)


def reference_forward(y, noise, params, matmul_dtype=jnp.float32):
    w1, b1, w2, b2, w3, b3 = params
    dt = matmul_dtype
    x = jnp.concatenate([y, noise], axis=1)
    h = jnp.dot(x.astype(dt), w1.T.astype(dt), preferred_element_type=jnp.float32) + b1
    h = jnp.where(h > 0, h, 0.1 * h)
    h = jnp.dot(h.astype(dt), w2.T.astype(dt), preferred_element_type=jnp.float32) + b2
    h = jnp.where(h > 0, h, 0.1 * h)
    return jnp.dot(h.astype(dt), w3.T.astype(dt), preferred_element_type=jnp.float32) + b3


if __name__ == "__main__":
    # GAN_Transform(temp, x_dim, y_dim, realG).forward(y, noise) == Generator(y, noise)
    # Generator: input_size = y_dim + x_dim, output_size = x_dim, hidden d = 10.
    B, x_dim, y_dim, d = 16, 4, 8, 10   # B=16 -> 2 batch tiles, exercises the grid

    key = jax.random.PRNGKey(0)
    kp, ky, kn = jax.random.split(key, 3)
    params = init_params(kp, d=d, input_size=y_dim + x_dim, output_size=x_dim)

    # One-time param preparation (split/transpose/bf16/lane-pad) outside the call path.
    prepped, dims = prepare_params(params, y_dim=y_dim)

    y = jax.random.normal(ky, (B, y_dim), jnp.float32)
    noise = jax.random.normal(kn, (B, x_dim), jnp.float32)

    # min_pallas_batch=0 forces the Pallas kernel even at this toy batch size
    # (the default gate routes tiny batches to the fused XLA path).
    out = gan_transform_forward(y, noise, prepped, dims, min_pallas_batch=0)
    out = jax.block_until_ready(out)
    out_np = np.asarray(out)

    # Compare against a bf16-matmul reference (same numerics as the kernel) and,
    # more loosely, against the pure-f32 PyTorch-equivalent reference.
    ref_bf16 = np.asarray(reference_forward(y, noise, params, matmul_dtype=jnp.bfloat16))
    ref_f32 = np.asarray(reference_forward(y, noise, params, matmul_dtype=jnp.float32))

    def rel_err(a, b):
        return np.linalg.norm(a - b) / np.linalg.norm(b)

    assert rel_err(out_np, ref_bf16) < 1e-2, rel_err(out_np, ref_bf16)
    assert rel_err(out_np, ref_f32) < 3e-2, rel_err(out_np, ref_f32)

    print("KERNEL_OK")
</pallas_src>

<mosaic_0001>
module attributes {stable_mosaic.version = 11 : i64} {
  func.func @gan_transform_kernel(%arg0: i32, %arg1: memref<8x8xf32, #tpu.memory_space<vmem>>, %arg2: memref<8x4xf32, #tpu.memory_space<vmem>>, %arg3: memref<8x128xbf16, #tpu.memory_space<vmem>>, %arg4: memref<4x128xbf16, #tpu.memory_space<vmem>>, %arg5: memref<1x128xf32, #tpu.memory_space<vmem>>, %arg6: memref<128x128xbf16, #tpu.memory_space<vmem>>, %arg7: memref<1x128xf32, #tpu.memory_space<vmem>>, %arg8: memref<128x4xbf16, #tpu.memory_space<vmem>>, %arg9: memref<1x4xf32, #tpu.memory_space<vmem>>, %arg10: memref<8x4xf32, #tpu.memory_space<vmem>>) attributes {dimension_semantics = [#tpu.dimension_semantics<parallel>], iteration_bounds = array<i64: 2>, scalar_prefetch = 0 : i64, scratch_operands = 0 : i64, tpu.core_type = #tpu.core_type<tc>, window_params = [{transform_indices = @transform_0, window_bounds = array<i64: 8, 8>}, {transform_indices = @transform_1, window_bounds = array<i64: 8, 4>}, {pipeline_mode = #tpu.pipeline_mode<synchronous>, transform_indices = @transform_2, window_bounds = array<i64: 8, 128>}, {pipeline_mode = #tpu.pipeline_mode<synchronous>, transform_indices = @transform_3, window_bounds = array<i64: 4, 128>}, {pipeline_mode = #tpu.pipeline_mode<synchronous>, transform_indices = @transform_4, window_bounds = array<i64: 1, 128>}, {pipeline_mode = #tpu.pipeline_mode<synchronous>, transform_indices = @transform_5, window_bounds = array<i64: 128, 128>}, {pipeline_mode = #tpu.pipeline_mode<synchronous>, transform_indices = @transform_6, window_bounds = array<i64: 1, 128>}, {pipeline_mode = #tpu.pipeline_mode<synchronous>, transform_indices = @transform_7, window_bounds = array<i64: 128, 4>}, {pipeline_mode = #tpu.pipeline_mode<synchronous>, transform_indices = @transform_8, window_bounds = array<i64: 1, 4>}, {transform_indices = @transform_9, window_bounds = array<i64: 8, 4>}]} {
    %c0 = arith.constant 0 : index
    %c0_0 = arith.constant 0 : index
    %0 = vector.load %arg1[%c0, %c0_0] : memref<8x8xf32, #tpu.memory_space<vmem>>, vector<8x8xf32>
    %1 = arith.truncf %0 : vector<8x8xf32> to vector<8x8xbf16>
    %c0_1 = arith.constant 0 : index
    %c0_2 = arith.constant 0 : index
    %2 = vector.load %arg2[%c0_1, %c0_2] : memref<8x4xf32, #tpu.memory_space<vmem>>, vector<8x4xf32>
    %3 = arith.truncf %2 : vector<8x4xf32> to vector<8x4xbf16>
    %c0_3 = arith.constant 0 : index
    %c0_4 = arith.constant 0 : index
    %4 = vector.load %arg3[%c0_3, %c0_4] : memref<8x128xbf16, #tpu.memory_space<vmem>>, vector<8x128xbf16>
    %cst = arith.constant dense<0.000000e+00> : vector<8x128xf32>
    %5 = tpu.matmul %1, %4, %cst {dimension_numbers = #tpu.dot_dimension_numbers<[1], [0], [0], [1], [0, 0, 1, 1], [], []>} : vector<8x8xbf16>, vector<8x128xbf16>, vector<8x128xf32> -> vector<8x128xf32>
    %c0_5 = arith.constant 0 : index
    %c0_6 = arith.constant 0 : index
    %6 = vector.load %arg4[%c0_5, %c0_6] : memref<4x128xbf16, #tpu.memory_space<vmem>>, vector<4x128xbf16>
    %cst_7 = arith.constant dense<0.000000e+00> : vector<8x128xf32>
    %7 = tpu.matmul %3, %6, %cst_7 {dimension_numbers = #tpu.dot_dimension_numbers<[1], [0], [0], [1], [0, 0, 1, 1], [], []>} : vector<8x4xbf16>, vector<4x128xbf16>, vector<8x128xf32> -> vector<8x128xf32>
    %8 = arith.addf %5, %7 : vector<8x128xf32>
    %c0_8 = arith.constant 0 : index
    %c0_9 = arith.constant 0 : index
    %9 = vector.load %arg5[%c0_8, %c0_9] : memref<1x128xf32, #tpu.memory_space<vmem>>, vector<1x128xf32>
    %10 = vector.broadcast %9 : vector<1x128xf32> to vector<8x128xf32>
    %11 = arith.addf %8, %10 : vector<8x128xf32>
    %cst_10 = arith.constant 1.000000e-01 : f32
    %12 = vector.broadcast %cst_10 : f32 to vector<8x128xf32>
    %13 = arith.mulf %12, %11 : vector<8x128xf32>
    %14 = arith.maximumf %11, %13 : vector<8x128xf32>
    %15 = arith.truncf %14 : vector<8x128xf32> to vector<8x128xbf16>
    %c0_11 = arith.constant 0 : index
    %c0_12 = arith.constant 0 : index
    %16 = vector.load %arg6[%c0_11, %c0_12] : memref<128x128xbf16, #tpu.memory_space<vmem>>, vector<128x128xbf16>
    %cst_13 = arith.constant dense<0.000000e+00> : vector<8x128xf32>
    %17 = tpu.matmul %15, %16, %cst_13 {dimension_numbers = #tpu.dot_dimension_numbers<[1], [0], [0], [1], [0, 0, 1, 1], [], []>} : vector<8x128xbf16>, vector<128x128xbf16>, vector<8x128xf32> -> vector<8x128xf32>
    %c0_14 = arith.constant 0 : index
    %c0_15 = arith.constant 0 : index
    %18 = vector.load %arg7[%c0_14, %c0_15] : memref<1x128xf32, #tpu.memory_space<vmem>>, vector<1x128xf32>
    %19 = vector.broadcast %18 : vector<1x128xf32> to vector<8x128xf32>
    %20 = arith.addf %17, %19 : vector<8x128xf32>
    %cst_16 = arith.constant 1.000000e-01 : f32
    %21 = vector.broadcast %cst_16 : f32 to vector<8x128xf32>
    %22 = arith.mulf %21, %20 : vector<8x128xf32>
    %23 = arith.maximumf %20, %22 : vector<8x128xf32>
    %24 = arith.truncf %23 : vector<8x128xf32> to vector<8x128xbf16>
    %c0_17 = arith.constant 0 : index
    %c0_18 = arith.constant 0 : index
    %25 = vector.load %arg8[%c0_17, %c0_18] : memref<128x4xbf16, #tpu.memory_space<vmem>>, vector<128x4xbf16>
    %cst_19 = arith.constant dense<0.000000e+00> : vector<8x4xf32>
    %26 = tpu.matmul %24, %25, %cst_19 {dimension_numbers = #tpu.dot_dimension_numbers<[1], [0], [0], [1], [0, 0, 1, 1], [], []>} : vector<8x128xbf16>, vector<128x4xbf16>, vector<8x4xf32> -> vector<8x4xf32>
    %c0_20 = arith.constant 0 : index
    %c0_21 = arith.constant 0 : index
    %27 = vector.load %arg9[%c0_20, %c0_21] : memref<1x4xf32, #tpu.memory_space<vmem>>, vector<1x4xf32>
    %28 = vector.broadcast %27 : vector<1x4xf32> to vector<8x4xf32>
    %29 = arith.addf %26, %28 : vector<8x4xf32>
    %c0_22 = arith.constant 0 : index
    %c0_23 = arith.constant 0 : index
    %30 = vector.load %arg10[%c0_22, %c0_23] : memref<8x4xf32, #tpu.memory_space<vmem>>, vector<8x4xf32>
    tpu.vector_store %arg10[%c0_22, %c0_23], %29 {strides = array<i32>} : memref<8x4xf32, #tpu.memory_space<vmem>>, vector<8x4xf32>,
    return
  }
  func.func @transform_0(%arg0: i32) -> (i32, i32) {
    %c0_i32 = arith.constant 0 : i32
    %c0_i32_0 = arith.constant 0 : i32
    return %arg0, %c0_i32 : i32, i32
  }
  func.func @transform_1(%arg0: i32) -> (i32, i32) {
    %c0_i32 = arith.constant 0 : i32
    %c0_i32_0 = arith.constant 0 : i32
    return %arg0, %c0_i32 : i32, i32
  }
  func.func @transform_2(%arg0: i32) -> (i32, i32) {
    %c0_i32 = arith.constant 0 : i32
    %c0_i32_0 = arith.constant 0 : i32
    %c0_i32_1 = arith.constant 0 : i32
    return %c0_i32, %c0_i32_0 : i32, i32
  }
  func.func @transform_3(%arg0: i32) -> (i32, i32) {
    %c0_i32 = arith.constant 0 : i32
    %c0_i32_0 = arith.constant 0 : i32
    %c0_i32_1 = arith.constant 0 : i32
    return %c0_i32, %c0_i32_0 : i32, i32
  }
  func.func @transform_4(%arg0: i32) -> (i32, i32) {
    %c0_i32 = arith.constant 0 : i32
    %c0_i32_0 = arith.constant 0 : i32
    %c0_i32_1 = arith.constant 0 : i32
    return %c0_i32, %c0_i32_0 : i32, i32
  }
  func.func @transform_5(%arg0: i32) -> (i32, i32) {
    %c0_i32 = arith.constant 0 : i32
    %c0_i32_0 = arith.constant 0 : i32
    %c0_i32_1 = arith.constant 0 : i32
    return %c0_i32, %c0_i32_0 : i32, i32
  }
  func.func @transform_6(%arg0: i32) -> (i32, i32) {
    %c0_i32 = arith.constant 0 : i32
    %c0_i32_0 = arith.constant 0 : i32
    %c0_i32_1 = arith.constant 0 : i32
    return %c0_i32, %c0_i32_0 : i32, i32
  }
  func.func @transform_7(%arg0: i32) -> (i32, i32) {
    %c0_i32 = arith.constant 0 : i32
    %c0_i32_0 = arith.constant 0 : i32
    %c0_i32_1 = arith.constant 0 : i32
    return %c0_i32, %c0_i32_0 : i32, i32
  }
  func.func @transform_8(%arg0: i32) -> (i32, i32) {
    %c0_i32 = arith.constant 0 : i32
    %c0_i32_0 = arith.constant 0 : i32
    %c0_i32_1 = arith.constant 0 : i32
    return %c0_i32, %c0_i32_0 : i32, i32
  }
  func.func @transform_9(%arg0: i32) -> (i32, i32) {
    %c0_i32 = arith.constant 0 : i32
    %c0_i32_0 = arith.constant 0 : i32
    return %arg0, %c0_i32 : i32, i32
  }
}

</mosaic_0001>

<bundles_post_ra>
// kernel: _gan_transform_forward_pallas.1
= control target key start
LH: loop header
LB: loop body
LE: loop exit
PB: predicated region body
PF: predicated region fallthrough
CT: control target
= control target key end

     0   :  { %s794_s30 = smov 0   ;;  %s884_s0 = inlined_call_operand.vmem [shape: f32[16,8], index: 0, kind: input, shape index: {}]   ;;  %s885_s1 = inlined_call_operand.vmem [shape: f32[16,4], index: 1, kind: input, shape index: {}]   ;;  %s886_s2 = inlined_call_operand.vmem [shape: bf16[8,128], index: 2, kind: input, shape index: {}]   ;;  %s887_s3 = inlined_call_operand.vmem [shape: bf16[4,128], index: 3, kind: input, shape index: {}]   ;;  %s888_s4 = inlined_call_operand.vmem [shape: f32[1,128], index: 4, kind: input, shape index: {}]   ;;  %s889_s5 = inlined_call_operand.vmem [shape: bf16[128,128], index: 5, kind: input, shape index: {}]   ;;  %s890_s6 = inlined_call_operand.vmem [shape: f32[1,128], index: 6, kind: input, shape index: {}]   ;;  %s891_s7 = inlined_call_operand.vmem [shape: bf16[128,4], index: 7, kind: input, shape index: {}]   ;;  %s892_s8 = inlined_call_operand.vmem [shape: f32[1,4], index: 8, kind: input, shape index: {}]   ;;  %s893_s9 = inlined_call_operand.vmem [shape: f32[16,4], index: 9, kind: output, shape index: {}]  }
   0x1 LB: > { %s633_s10 = sadd.s32 4294967295, %s742_s30   ;;  %p637_p0 = scmp.ge.s32.totalorder %s742_s30, 1  ;;  %s742_s30 = sphi %s794_s30, %s19_s30  }
   0x2   : > { %p295_p1 = scmp.lt.s32.totalorder %s742_s30, 3 }
   0x4   : > { %p296_p2 = pnand %p637_p0, %p295_p1 }
   0x5   : > { %p333_p3 = scmp.lt.s32.totalorder (!%p296_p2), %s633_s10, 1 }
   0x6   : > { %299 = sbr.rel (%p296_p2) target bundleno = 434 (0x1b2), region = 56 }
   0xb   : > { %v351_v0 = vld [vmem:[%s887_s3] sm:$0x3]  ;;  %vm356_vm0 = vcmask 1041408   ;;  %vm377_vm1 = vcmask 1043456   ;;  %v716_v4 = vld [vmem:[%s889_s5 + $0x38] sm:$0xff]  ;;  %s895_s10 = smov (!%p333_p3, %s633_s10), 1 }
   0xc   : > { %v350_v1 = vld [vmem:[%s886_s2] sm:$0xf]  ;;  %v358_v2 = vsel %vm356_vm0, %v351_v0, 0  ;;  %470 = vmatpush.bf16.msra.mxu2 %v716_v4  ;;  %v715_v5 = vld [vmem:[%s889_s5 + $0x30] sm:$0xff]  ;;  %s814_s19 = sshll.u32 %s895_s10, 3  ;;  %vm352_vm2 = vcmask 31744  }
   0xd   : > { %v379_v3 = vsel %vm377_vm1, %v350_v1, 0  ;;  %367 = vmatpush.bf16.msra.mxu0 %v358_v2  ;;  %s340_s22 = scalar_lea.vmem %s885_s1, %s814_s19  ;;  %s336_s25 = scalar_lea.vmem %s884_s0, %s814_s19  ;;  %vm373_vm3 = vcmask 64512   ;;  %v714_v8 = vld [vmem:[%s889_s5 + $0x28] sm:$0xff]  ;;  %v713_v11 = vld [vmem:[%s889_s5 + $0x20] sm:$0xff]  ;;  %v712_v12 = vld [vmem:[%s889_s5 + $0x18] sm:$0xff] }
   0xe   : > { %388 = vmatpush.bf16.msra.mxu1 %v379_v3  ;;  %v348_v6 = vld [vmem:[%s340_s22] sm:$0xff]  ;;  %v711_v13 = vld [vmem:[%s889_s5 + $0x10] sm:$0xff]  ;;  %v710_v14 = vld [vmem:[%s889_s5 + $0x8] sm:$0xff]  ;;  %s344_s24 = scalar_lea.vmem %s893_s9, %s814_s19 }
   0xf   : > { %v346_v7 = vld [vmem:[%s336_s25] sm:$0xff]  ;;  %v349_v9 = vpack.c.bf16 %v348_v6, %v348_v6  ;;  %v724_v16 = vld [vmem:[%s891_s7 + $0x38] sm:$0xff]  ;;  %v723_v17 = vld [vmem:[%s891_s7 + $0x30] sm:$0xff] }
  0x10   : > { %471 = vmatpush.bf16.msra.mxu2 %v715_v5  ;;  %v347_v10 = vpack.c.bf16 %v346_v7, %v346_v7  ;;  %v709_v15 = vld [vmem:[%s889_s5] sm:$0xff]  ;;  %554 = vmatpush.bf16.msra.mxu3 %v724_v16  ;;  %v722_v18 = vld [vmem:[%s891_s7 + $0x28] sm:$0xff]  ;;  %v720_v20 = vld [vmem:[%s891_s7 + $0x18] sm:$0xff] }
  0x11   : > { %641 = vmatmul.msk.bf16.vlgmr.msra.gmra.mxu0 %vm352_vm2, %v349_v9  ;;  %v721_v19 = vld [vmem:[%s891_s7 + $0x20] sm:$0xff]  ;;  %v719_v21 = vld [vmem:[%s891_s7 + $0x10] sm:$0xff]  ;;  %v718_v32 = vld [vmem:[%s891_s7 + $0x8] sm:$0xff] }
  0x12   : > { %642 = vmatmul.msk.bf16.vlgmr.msra.gmra.mxu1 %vm373_vm3, %v347_v10  ;;  %v733_v22 = vld [vmem:[%s888_s4] ss:$0 sm:$0xff] }
  0x13   : > { %v717_v33 = vld [vmem:[%s891_s7] sm:$0xff] }
  0x14   : > { %472 = vmatpush.bf16.msra.mxu2 %v714_v8  ;;  %555 = vmatpush.bf16.msra.mxu3 %v723_v17  ;;  %v734_v34 = vld [vmem:[%s890_s6] ss:$0 sm:$0xff] }
  0x15   : > { %v735_v41 = vld [vmem:[%s892_s8] ss:$0 sm:$0xff] }
  0x18   : > { %473 = vmatpush.bf16.msra.mxu2 %v713_v11  ;;  %556 = vmatpush.bf16.msra.mxu3 %v722_v18 }
  0x1c   : > { %474 = vmatpush.bf16.msra.mxu2 %v712_v12  ;;  %557 = vmatpush.bf16.msra.mxu3 %v721_v19 }
  0x20   : > { %475 = vmatpush.bf16.msra.mxu2 %v711_v13  ;;  %558 = vmatpush.bf16.msra.mxu3 %v720_v20 }
  0x24   : > { %476 = vmatpush.bf16.msra.mxu2 %v710_v14  ;;  %559 = vmatpush.bf16.msra.mxu3 %v719_v21 }
  0x28   : > { %477 = vmatpush.bf16.msra.mxu2 %v709_v15  ;;  %560 = vmatpush.bf16.msra.mxu3 %v718_v32 }
  0x2c   : > { %561 = vmatpush.bf16.msra.mxu3 %v717_v33 }
  0x8e   : > { %v369_v23 = vpop.f32.mrf.mxu0 }
  0x8f   : > { %v390_v24 = vpop.f32.mrf.mxu1 }
  0x90   : > { %v391_v25 = vadd.f32 %v390_v24, %v369_v23 }
  0x92   : > { %v398_v26 = vadd.f32 %v733_v22, %v391_v25 }
  0x94   : > { %v399_v27 = vmul.f32 0.1, %v398_v26 }
  0x96   : > { %v400_v28 = vmax.f32 %v398_v26, %v399_v27  ;;  %v371_v29 = vpop.f32.mrf.mxu0 }
  0x97   : > { %v392_v30 = vpop.f32.mrf.mxu1 }
  0x98   : > { %v401_v31 = vpack.c.bf16 %v400_v28, %v400_v28 }
  0x9a   : > { %478 = vmatmul.bf16.vlgmr.msra.gmra.mxu2 %v401_v31 }
 0x11d   : > { %v479_v35 = vpop.f32.mrf.mxu2 }
 0x11e   : > { %v480_v36 = vadd.f32 %v734_v34, %v479_v35 }
 0x120   : > { %v483_v37 = vmul.f32 0.1, %v480_v36 }
 0x122   : > { %v484_v38 = vmax.f32 %v480_v36, %v483_v37 }
 0x124   : > { %v485_v39 = vpack.c.bf16 %v484_v38, %v484_v38 }
 0x125   : > { %v481_v40 = vpop.f32.mrf.mxu2 }
 0x126   : > { %562 = vmatmul.bf16.vlgmr.msra.gmra.mxu3 %v485_v39 }
 0x1a9   : > { %v563_v42 = vpop.f32.mrf.mxu3 }
 0x1aa   : > { %v564_v43 = vadd.f32 %v735_v41, %v563_v42 }
 0x1ac   : > { %567 = vst.msk [vmem:[%s344_s24] sm:$0xff] %vm352_vm2, %v564_v43 }
 0x1b1   : > { %v565_v44 = vpop.f32.mrf.mxu3 }
 0x1b2 PF: > { %s19_s30 = sadd.s32 1, %s742_s30  }
 0x1b3   : > { %p16_p4 = scmp.ge.s32.totalorder %s19_s30, 4  }
 0x1b5   :  { %18 = sbr.rel (!%p16_p4) target bundleno = 1 (0x1), region = 89 }

</bundles_post_ra>
